<compile_context>
chip_gen: v6e
topology: v6e:2x2x1
jax: 0.10.0
libtpu: 0.0.40
codegen_flags: <defaults>
</compile_context>

<pallas_src>
import jax
import jax.numpy as jnp
from jax.experimental import pallas as pl
from jax.experimental.pallas import tpu as pltpu


# ------------------------------ grid buffer ----------------------------------

def build_grid(resolution):
    """Same as the SAVi reference: (1, H, W, 2*len(resolution)) in [0, 1]."""
    ranges = [jnp.linspace(0.0, 1.0, num=r) for r in resolution]
    grid = jnp.stack(jnp.meshgrid(*ranges, indexing="ij"), axis=-1)
    grid = grid[None].astype(jnp.float32)                 # (1, H, W, 2)
    return jnp.concatenate([grid, 1.0 - grid], axis=-1)   # (1, H, W, 4)


# ------------------------------ Pallas kernel --------------------------------

def _softpos_kernel(x_ref, w_ref, g_ref, o_ref):
    # x_ref: (1, hidden, TILE) f32   -- input spatial tile (channel-major)
    # w_ref: (hidden, Kp)      bf16  -- torch-layout weight with bias folded in
    # g_ref: (Kp, TILE)        bf16  -- grid^T (+ ones row) spatial tile
    # emb[c, hw] = sum_k W[c, k] * grid[hw, k] + b[c]   (bias via ones row)
    emb = jnp.dot(w_ref[...], g_ref[...], preferred_element_type=jnp.float32)
    o_ref[0] = x_ref[0] + emb


def soft_position_embed(inputs, w_aug, grid_aug):
    """inputs: (B, hidden, H, W) f32; returns inputs + dense(grid).permute."""
    B, Ch, H, W = inputs.shape
    HW = H * W
    Kp = w_aug.shape[1]
    tile = 128 if (HW % 128 == 0) else HW      # lane-dense tiles, or full extent
    n_t = HW // tile

    x3 = inputs.reshape(B, Ch, HW).astype(jnp.float32)
    out = pl.pallas_call(
        _softpos_kernel,
        out_shape=jax.ShapeDtypeStruct((B, Ch, HW), jnp.float32),
        grid=(B, n_t),
        in_specs=[
            pl.BlockSpec((1, Ch, tile), lambda b, j: (b, 0, j)),
            pl.BlockSpec((Ch, Kp), lambda b, j: (0, 0)),
            pl.BlockSpec((Kp, tile), lambda b, j: (0, j)),
        ],
        out_specs=pl.BlockSpec((1, Ch, tile), lambda b, j: (b, 0, j)),
        compiler_params=pltpu.CompilerParams(
            dimension_semantics=("parallel", "parallel")),
    )(x3, w_aug, grid_aug)
    return out.reshape(B, Ch, H, W)


# ------------------------------ module wrapper --------------------------------

class SoftPositionEmbedPallas:
    """JAX/Pallas port of SAVi's SoftPositionEmbed forward pass."""

    def __init__(self, key, num_channels, hidden_size, resolution):
        self.hidden_size = hidden_size
        self.resolution = tuple(resolution)
        in_features = num_channels + 1                   # grid channels (4 for 2-D)
        grid = build_grid(resolution)                    # (1, H, W, in_features)
        assert grid.shape[-1] == in_features, "grid channels != num_channels + 1"

        kw, kb = jax.random.split(key)
        bound = 1.0 / (in_features ** 0.5)
        # torch nn.Linear layout: weight (out_features, in_features), bias (out,)
        self.weight = jax.random.uniform(kw, (hidden_size, in_features),
                                         jnp.float32, -bound, bound)
        self.bias = jax.random.uniform(kb, (hidden_size,), jnp.float32,
                                       -bound, bound)
        self.grid = grid

        # One-time precompute (hoisted out of forward): pre-transposed grid,
        # bias folded into the matmul, sublane-aligned K, pre-cast to bf16.
        H, Wd = self.resolution
        HW = H * Wd
        g_t = grid.reshape(HW, in_features).T                         # (in, HW)
        g_aug = jnp.concatenate([g_t, jnp.ones((1, HW), jnp.float32)], axis=0)
        w_aug = jnp.concatenate([self.weight, self.bias[:, None]], axis=1)
        k_eff = in_features + 1
        k_pad = (-k_eff) % 8                                          # align K to 8
        if k_pad:
            g_aug = jnp.pad(g_aug, ((0, k_pad), (0, 0)))
            w_aug = jnp.pad(w_aug, ((0, 0), (0, k_pad)))
        self._grid_aug = g_aug.astype(jnp.bfloat16)                   # (Kp, HW)
        self._w_aug = w_aug.astype(jnp.bfloat16)                      # (hidden, Kp)

    def forward(self, inputs):
        B, C, H, W = inputs.shape
        # assert_shape from the reference, done host-side on static shapes.
        assert (C, H, W) == (self.hidden_size,) + self.resolution, \
            "input shape must match (hidden_size, *resolution)"
        return soft_position_embed(inputs, self._w_aug, self._grid_aug)

    def forward_reference(self, inputs):
        """Pure-JAX f32 reference of the PyTorch forward."""
        emb = jnp.einsum("bhwc,oc->bhwo", self.grid, self.weight) + self.bias
        emb = jnp.transpose(emb, (0, 3, 1, 2))            # (1, hidden, H, W)
        return inputs + emb


# ---------------------------------- main --------------------------------------

if __name__ == "__main__":
    key = jax.random.PRNGKey(0)
    pkey, xkey = jax.random.split(key)

    hidden_size = 32
    resolution = (16, 16)
    module = SoftPositionEmbedPallas(pkey, num_channels=3,
                                     hidden_size=hidden_size,
                                     resolution=resolution)

    x = jax.random.normal(xkey, (2, hidden_size, resolution[0], resolution[1]),
                          dtype=jnp.float32)

    out = jax.block_until_ready(module.forward(x))
    ref = module.forward_reference(x)

    assert out.shape == x.shape
    assert bool(jnp.all(jnp.isfinite(out)))
    max_err = float(jnp.max(jnp.abs(out - ref)))
    assert max_err < 5e-2, f"max abs error vs reference: {max_err}"
    print("KERNEL_OK")
</pallas_src>

<mosaic_0001>
module attributes {stable_mosaic.version = 11 : i64} {
  func.func @_softpos_kernel(%arg0: i32, %arg1: i32, %arg2: memref<1x32x128xf32, #tpu.memory_space<vmem>>, %arg3: memref<32x8xbf16, #tpu.memory_space<vmem>>, %arg4: memref<8x128xbf16, #tpu.memory_space<vmem>>, %arg5: memref<1x32x128xf32, #tpu.memory_space<vmem>>) attributes {dimension_semantics = [#tpu.dimension_semantics<parallel>, #tpu.dimension_semantics<parallel>], iteration_bounds = array<i64: 2, 2>, scalar_prefetch = 0 : i64, scratch_operands = 0 : i64, tpu.core_type = #tpu.core_type<tc>, window_params = [{transform_indices = @transform_0, window_bounds = array<i64: 1, 32, 128>}, {pipeline_mode = #tpu.pipeline_mode<synchronous>, transform_indices = @transform_1, window_bounds = array<i64: 32, 8>}, {transform_indices = @transform_2, window_bounds = array<i64: 8, 128>}, {transform_indices = @transform_3, window_bounds = array<i64: 1, 32, 128>}]} {
    %c0 = arith.constant 0 : index
    %c0_0 = arith.constant 0 : index
    %0 = vector.load %arg3[%c0, %c0_0] : memref<32x8xbf16, #tpu.memory_space<vmem>>, vector<32x8xbf16>
    %c0_1 = arith.constant 0 : index
    %c0_2 = arith.constant 0 : index
    %1 = vector.load %arg4[%c0_1, %c0_2] : memref<8x128xbf16, #tpu.memory_space<vmem>>, vector<8x128xbf16>
    %cst = arith.constant dense<0.000000e+00> : vector<32x128xf32>
    %2 = tpu.matmul %0, %1, %cst {dimension_numbers = #tpu.dot_dimension_numbers<[1], [0], [0], [1], [0, 0, 1, 1], [], []>} : vector<32x8xbf16>, vector<8x128xbf16>, vector<32x128xf32> -> vector<32x128xf32>
    %c0_3 = arith.constant 0 : index
    %c0_4 = arith.constant 0 : index
    %c0_5 = arith.constant 0 : index
    %3 = vector.load %arg2[%c0_3, %c0_4, %c0_5] : memref<1x32x128xf32, #tpu.memory_space<vmem>>, vector<1x32x128xf32>
    %4 = vector.shape_cast %3 : vector<1x32x128xf32> to vector<32x128xf32>
    %5 = arith.addf %4, %2 : vector<32x128xf32>
    %c0_6 = arith.constant 0 : index
    %c0_7 = arith.constant 0 : index
    %c0_8 = arith.constant 0 : index
    %6 = vector.load %arg5[%c0_6, %c0_7, %c0_8] : memref<1x32x128xf32, #tpu.memory_space<vmem>>, vector<1x32x128xf32>
    %7 = vector.shape_cast %6 : vector<1x32x128xf32> to vector<32x128xf32>
    %8 = vector.shape_cast %5 : vector<32x128xf32> to vector<1x32x128xf32>
    tpu.vector_store %arg5[%c0_6, %c0_7, %c0_8], %8 {strides = array<i32>} : memref<1x32x128xf32, #tpu.memory_space<vmem>>, vector<1x32x128xf32>,
    return
  }
  func.func @transform_0(%arg0: i32, %arg1: i32) -> (i32, i32, i32) {
    %c0_i32 = arith.constant 0 : i32
    %c0_i32_0 = arith.constant 0 : i32
    return %arg0, %c0_i32, %arg1 : i32, i32, i32
  }
  func.func @transform_1(%arg0: i32, %arg1: i32) -> (i32, i32) {
    %c0_i32 = arith.constant 0 : i32
    %c0_i32_0 = arith.constant 0 : i32
    %c0_i32_1 = arith.constant 0 : i32
    return %c0_i32, %c0_i32_0 : i32, i32
  }
  func.func @transform_2(%arg0: i32, %arg1: i32) -> (i32, i32) {
    %c0_i32 = arith.constant 0 : i32
    %c0_i32_0 = arith.constant 0 : i32
    return %c0_i32, %arg1 : i32, i32
  }
  func.func @transform_3(%arg0: i32, %arg1: i32) -> (i32, i32, i32) {
    %c0_i32 = arith.constant 0 : i32
    %c0_i32_0 = arith.constant 0 : i32
    return %arg0, %c0_i32, %arg1 : i32, i32, i32
  }
}

</mosaic_0001>

<bundles_post_ra>
// kernel: tpu_custom_call.1
= control target key start
LH: loop header
LB: loop body
LE: loop exit
PB: predicated region body
PF: predicated region fallthrough
CT: control target
= control target key end

     0   :  { %8 = vsyncpa [#allocation3], 0  ;;  %s879_s0 = inlined_call_operand.hbm [shape: f32[2,32,256], index: 0, kind: input, shape index: {}]   ;;  %s880_s1 = inlined_call_operand.vmem [shape: bf16[32,8], index: 1, kind: input, shape index: {}]   ;;  %s881_s2 = inlined_call_operand.vmem [shape: bf16[8,256], index: 2, kind: input, shape index: {}]   ;;  %s882_s3 = inlined_call_operand.hbm [shape: f32[2,32,256], index: 3, kind: output, shape index: {}]  }
   0x1   :  { %10 = vsyncpa [#allocation3 + $0x1], 0 }
   0x2   :  { %11 = vsyncpa [#allocation4], 0 }
   0x3   :  { %13 = vsyncpa [#allocation4 + $0x1], 0  ;;  %s696_s12 = smov 0   ;;  %s698_s13 = smov 0  }
   0x4   :  { %s700_s14 = smov 0   ;;  %s702_s15 = smov 0  }
   0x5   :  { %s704_s16 = smov 0   ;;  %s706_s17 = smov 0  }
   0x6   :  { %s708_s18 = smov 0   ;;  %s710_s19 = smov 0  }
   0x7 LB: > { %s426_s20 = sadd.s32 4294967295, %s666_s19   ;;  %s427_s21 = sadd.s32 4294967294, %s666_s19   ;;  %s666_s19 = sphi %s710_s19, %s19_s19   ;;  %s662_s18 = sphi %s708_s18, %s900_s18   ;;  %s658_s17 = sphi %s706_s17, %s899_s17   ;;  %s654_s16 = sphi %s704_s16, %s898_s16   ;;  %s650_s15 = sphi %s702_s15, %s897_s15   ;;  %s646_s14 = sphi %s700_s14, %s896_s14   ;;  %s642_s13 = sphi %s698_s13, %s895_s13   ;;  %s638_s12 = sphi %s696_s12, %s894_s12  }
   0x8   : > { %s28_s22 = sadd.s32 1, %s658_s17  ;;  %s31_s23 = sadd.s32 1, %s662_s18 }
   0x9   : > { %p29_p0 = scmp.ge.s32.totalorder %s28_s22, 2  ;;  %s40_s24 = sadd.s32 1, %s646_s14 }
   0xa   : > { %p47_p1 = scmp.ne.s32.totalorder %s646_s14, %s642_s13  ;;  %p48_p2 = scmp.eq.s32.totalorder %s666_s19, 0 }
   0xb   : > { %s902_s22 = smov (%p29_p0, %s28_s22), 0  ;;  %s904_s23 = smov (!%p29_p0, %s31_s23), %s662_s18 }
   0xc   : > { %885 = sst [smem:[#allocation8_spill]] %s902_s22  ;;  %s36_s25 = ssub.s32 %s658_s17, %s902_s22 }
   0xd   : > { %p749_p3 = por %p48_p2, %p47_p1  ;;  %p33_p4 = scmp.ge.s32.totalorder %s904_s23, 2 }
   0xe   : > { %p53_p5 = scmp.ne.s32.totalorder %s642_s13, %s638_s12  ;;  %p54_p6 = scmp.eq.s32.totalorder %s426_s20, 0 }
   0xf   : > { %p126_p7 = scmp.eq.s32.totalorder %s426_s20, 3  ;;  %s906_s23 = smov (%p33_p4, %s904_s23), 0 }
  0x10   : > { %887 = sst [smem:[#allocation9_spill]] %s906_s23  ;;  %p757_p8 = por %p54_p6, %p53_p5 }
  0x11   : > { %p761_p9 = por %p126_p7, %p47_p1  ;;  %s35_s29 = ssub.s32 %s662_s18, %s906_s23 }
  0x12   : > { %p132_p10 = scmp.eq.s32.totalorder %s427_s21, 3  ;;  %s37_s30 = sor.u32 %s36_s25, %s35_s29 }
  0x13   : > { %p38_p11 = scmp.eq.s32.totalorder %s37_s30, 0  ;;  %p468_p13 = scmp.lt.s32.totalorder %s666_s19, 4 }
  0x14   : > { %p767_p12 = por %p132_p10, %p53_p5  ;;  %s155_s5 = sand.u32 1, %s646_s14  }
  0x15   : > { %s774_s6 = scalar_select %p38_p11, %s646_s14, %s40_s24  }
  0x16   : > { %s430_s7 = sshll.u32 %s155_s5, 5  ;;  %s431_s8 = sshll.u32 %s662_s18, 3 }
  0x17   : > { %s164_s9 = sadd.s32 %s658_s17, %s431_s8  ;;  %s159_s10 = scalar_lea.vmem [#allocation2], %s430_s7 }
  0x18   : > { %s167_s11 = sshll.u32 %s159_s10, 4  ;;  %s432_s20 = sshll.u32 %s164_s9, 7  ;;  %s168_s11 = int_to_ptr.vmem [resolvable:$true] %s167_s11 }
  0x19   : > { %s166_s21 = scalar_lea.hbm %s879_s0, %s432_s20  ;;  %p783_p0 = pnand %p468_p13, %p749_p3 }
  0x1a   : > { %s156_s29 = scalar_lea.sflag [#allocation3], %s155_s5  ;;  %s555_s24 = scalar_lea.vmem %s168_s11, 512 }
  0x1b   : > { %p544_p1 = pneg %p783_p0  ;;  %p556_p2 = scmp.ne.s32.totalorder %s168_s11, %s555_s24 }
  0x1c   : > { %s668_s30 = smov [#allocation2]  }
  0x1d   : > { %p558_p4 = pnand %p556_p2, %p544_p1  ;;  %s560_s7 = sshll.u32 %s668_s30, 4  ;;  %s561_s7 = int_to_ptr.vmem [resolvable:$false] %s560_s7 }
  0x1e   : > { %s562_s8 = scalar_lea.vmem %s561_s7, 1024  ;;  %p563_p6 = scmp.lt.s32.totalorder %s168_s11, %s561_s7 }
  0x1f   : > { %p559_p5 = pneg %p558_p4  ;;  %p564_p7 = scmp.lt.s32.totalorder %s562_s8, %s555_s24 }
  0x21   : > { %p565_p10 = por %p564_p7, %p563_p6 }
  0x23   : > { %p566_p11 = pnand %p565_p10, %p559_p5 }
  0x25   : > { %569 = shalt.err (!%p566_p11)
}
  0x26   : > { %s669_s22 = smov 256   ;;  %s670_s23 = smov 128  }
  0x27   : > { %s671_s26 = smov 8   ;;  %p433_p3 = scmp.ge.s32.totalorder %s666_s19, 1 }
  0x28   : > { %463 = dma.hbm_to_vmem [thread:$0]  (!%p783_p0), %s166_s21, 512, %s168_s11, %s156_s29, %s669_s22, %s670_s23, %s671_s26  }
  0x29   : > { %p182_p13 = scmp.lt.s32.totalorder %s666_s19, 5 }
  0x2b   : > { %p183_p1 = pnand %p433_p3, %p182_p13 }
  0x2c   : > { %s794_s5 = sand.u32 (!%p183_p1), 1, %s642_s13  }
  0x2d   : > { %186 = sbr.rel (%p183_p1) target bundleno = 278 (0x116), region = 32  ;;  %s434_s9 = sshll.u32 (!%p183_p1), %s794_s5, 5 }
  0x2e   : > { %s189_s10 = scalar_lea.sflag (!%p183_p1), [#allocation3], %s794_s5  ;;  %s798_s20 = scalar_lea.vmem (!%p183_p1), [#allocation2], %s434_s9 }
  0x32   : > { %629 = dma.done.wait (%p757_p8), %s189_s10, 512  }
  0x33   : > { %631 = vsyncadd (%p757_p8), %s189_s10, 4294966784  ;;  %p219_p0 = scmp.lt.s32.totalorder %s650_s15, 1  ;;  %vm246_vm0 = vcmask 1043456   ;;  %vm239_vm1 = vcmask 64512   ;;  %v540_v2 = vld [vmem:[%s880_s1] sm:$0xff]   ;;  %v541_v3 = vld [vmem:[%s880_s1 + $0x8] sm:$0xff]  }
  0x34   : > { %451 = vmatprep.mubr.msk.bf16.mxu0 %vm239_vm1, %v540_v2  ;;  %s442_s22 = sshll.u32 %s654_s16, 3  ;;  %v301_v4 = vld [vmem:[%s798_s20 + $0x10] sm:$0xff]  ;;  %v299_v6 = vld [vmem:[%s798_s20] sm:$0xff]  ;;  %s218_s26 = scalar_lea.vmem [#allocation5], %s434_s9  ;;  %v302_v9 = vld [vmem:[%s798_s20 + $0x18] sm:$0xff] }
  0x35   : > { %s220_s11 = scalar_select %p219_p0, %s650_s15, 1  ;;  %v300_v12 = vld [vmem:[%s798_s20 + $0x8] sm:$0xff] }
  0x36   : > { %s323_s23 = sadd.s32 %s650_s15, %s442_s22  ;;  %s326_s10 = sshll.u32 %s218_s26, 4  ;;  %s821_s10 = int_to_ptr.vmem [resolvable:$true] %s326_s10 }
  0x37   : > { %s436_s21 = sshll.u32 %s220_s11, 2  ;;  %s443_s11 = sshll.u32 %s323_s23, 7 }
  0x38   : > { %s222_s24 = scalar_lea.vmem %s881_s2, %s436_s21  ;;  %s826_s9 = scalar_lea.hbm %s882_s3, %s443_s11 }
  0x39   : > { %v228_v0 = vld [vmem:[%s222_s24] sm:$0xf]  ;;  %s312_s21 = scalar_lea.sflag [#allocation4], %s794_s5  ;;  %s570_s25 = scalar_lea.vmem %s821_s10, 512 }
  0x3a   : > { %455 = vmatprep.subr.msk.bf16.mxu0 %vm246_vm0, %v228_v0  ;;  %v248_v1 = vsel %vm246_vm0, %v228_v0, 0  ;;  %p571_p8 = scmp.ne.s32.totalorder %s821_s10, %s570_s25  ;;  %s672_s20 = smov [#allocation5]  }
  0x3b   : > { %450 = vmatpush3.bf16.msra.mxu0 %v248_v1  ;;  %s574_s29 = sshll.u32 %s672_s20, 4  ;;  %s575_s29 = int_to_ptr.vmem [resolvable:$false] %s574_s29 }
  0x3c   : > { %p572_p2 = pnand %p571_p8, %p761_p9  ;;  %s576_s24 = scalar_lea.vmem %s575_s29, 1024 }
  0x3d   : > { %p577_p5 = scmp.lt.s32.totalorder %s821_s10, %s575_s29  ;;  %p578_p6 = scmp.lt.s32.totalorder %s576_s24, %s570_s25 }
  0x3e   : > { %452 = vmatmul.mubr.msk.bf16.vlgmr.msra.gmra.mxu0 %vm239_vm1, %v541_v3  ;;  %p573_p4 = pneg %p572_p2 }
  0x3f   : > { %p579_p7 = por %p578_p6, %p577_p5 }
  0x41   : > { %p580_p10 = pnand %p579_p7, %p573_p4 }
  0xfe   : > { %v453_v5 = vpop.f32.mrf.mxu0 }
  0xff   : > { %v305_v7 = vadd.f32 %v453_v5, %v301_v4 }
 0x100   : > { %v284_v8 = vpop.f32.mrf.mxu0 }
 0x101   : > { %309 = vst [vmem:[%s218_s26 + $0x10] sm:$0xff] %v305_v7  ;;  %v303_v10 = vadd.f32 %v299_v6, %v284_v8 }
 0x102   : > { %v454_v11 = vpop.f32.mrf.mxu0 }
 0x103   : > { %307 = vst [vmem:[%s218_s26] sm:$0xff] %v303_v10  ;;  %v306_v13 = vadd.f32 %v454_v11, %v302_v9 }
 0x104   : > { %v287_v14 = vpop.f32.mrf.mxu0 }
 0x105   : > { %310 = vst [vmem:[%s218_s26 + $0x18] sm:$0xff] %v306_v13  ;;  %v304_v15 = vadd.f32 %v300_v12, %v287_v14 }
 0x107   : > { %308 = vst [vmem:[%s218_s26 + $0x8] sm:$0xff] %v304_v15 }
 0x108   : > { %583 = shalt.err (!%p580_p10)
}
 0x109   : > { %s584_s27 = scalar_lea.hbm %s826_s9, 512  ;;  %s588_s8 = scalar_lea.hbm %s882_s3, 2048 }
 0x10a   : > { %p585_p11 = scmp.ne.s32.totalorder %s826_s9, %s584_s27  ;;  %p589_p1 = scmp.lt.s32.totalorder %s826_s9, %s882_s3 }
 0x10b   : > { %p590_p0 = scmp.lt.s32.totalorder %s588_s8, %s584_s27 }
 0x10c   : > { %p586_p3 = pnand %p585_p11, %p761_p9 }
 0x10d   : > { %p591_p8 = por %p590_p0, %p589_p1 }
 0x10e   : > { %p587_p13 = pneg %p586_p3 }
 0x110   : > { %p592_p2 = pnand %p591_p8, %p587_p13 }
 0x112   : > { %595 = shalt.err (!%p592_p2)
}
 0x113   : > { %s673_s26 = smov 128   ;;  %s674_s11 = smov 256  }
 0x114   : > { %s675_s15 = smov 8  }
 0x115   : > { %458 = dma.vmem_to_hbm [thread:$0]  (%p761_p9), %s821_s10, 512, %s826_s9, %s312_s21, %s673_s26, %s674_s11, %s675_s15  }
 0x116 PF: > { %p469_p4 = scmp.ge.s32.totalorder %s666_s19, 2  ;;  %s341_s16 = sand.u32 1, %s638_s12  }
 0x117   : > { %s342_s25 = scalar_lea.sflag [#allocation4], %s341_s16 }
 0x118   : > { %p465_p5 = pnand %p469_p4, %p767_p12 }
 0x11a   : > { %p466_p6 = pneg %p465_p5 }
 0x11c   : > { %633 = dma.done.wait (%p466_p6), %s342_s25, 512  }
 0x11d   : > { %635 = vsyncadd (%p466_p6), %s342_s25, 4294966784  ;;  %s19_s19 = sadd.s32 1, %s666_s19   ;;  %s892_s28 = sld [smem:[#allocation8_spill]] }
 0x11e   : > { %p16_p7 = scmp.ge.s32.totalorder %s19_s19, 6   ;;  %s893_s5 = sld [smem:[#allocation9_spill]] }
 0x11f   : > { %s894_s12 = smov %s642_s13  ;;  %s895_s13 = smov %s646_s14 }
 0x120   : > { %s896_s14 = smov %s774_s6  ;;  %s897_s15 = smov %s658_s17 }
 0x121   : > { %s898_s16 = smov %s662_s18  ;;  %18 = sbr.rel (!%p16_p7) target bundleno = 7 (0x7), region = 80 }
 0x123   : > { %s899_s17 = smov %s892_s28 }
 0x124   : > { %s900_s18 = smov %s893_s5 }
 0x126   :  { %347 = vsyncpa [#allocation3], 1 }
 0x127   :  { %349 = vsyncpa [#allocation3 + $0x1], 1 }
 0x128   :  { %350 = vsyncpa [#allocation4], 1 }
 0x129   :  { %352 = vsyncpa [#allocation4 + $0x1], 1 }

</bundles_post_ra>
